<compile_context>
chip_gen: v5e
topology: v5e:2x2
jax: 0.10.0
libtpu: 0.0.40
codegen_flags: <defaults>
</compile_context>

<pallas_src>
import jax
import jax.numpy as jnp
from jax.experimental import pallas as pl
from jax.experimental.pallas import tpu as pltpu


def _round_up(x: int, m: int) -> int:
    return (x + m - 1) // m * m


def _normalize_kernel(scale_ref, bias_ref, img_ref, out_ref):
    # scale_ref / bias_ref : VMEM (r_blk, 1) f32 — broadcast along lanes for free.
    # img_ref   / out_ref  : VMEM (r_blk, l_blk) tiles.
    x = img_ref[...].astype(jnp.float32)
    out_ref[...] = (x * scale_ref[...] + bias_ref[...]).astype(out_ref.dtype)


def normalization_forward(img_nchw: jax.Array, mean: jax.Array, std: jax.Array) -> jax.Array:
    """(img - mean[:,None,None]) / std[:,None,None], img in NCHW."""
    n, c, h, w = img_nchw.shape
    in_dtype = img_nchw.dtype
    out_dtype = in_dtype if jnp.issubdtype(in_dtype, jnp.floating) else jnp.float32
    itemsize = jnp.dtype(in_dtype).itemsize

    # Fused scale/shift: (x - m) / s == x * (1/s) + (-m/s). Params kept in f32.
    scale = 1.0 / std.astype(jnp.float32)                     # (C,)
    bias = (-mean.astype(jnp.float32)) * scale                # (C,)

    rows, cols = n * c, h * w
    rep = 1
    if rows < 8:
        # Fold part of H into the row axis so the sublane dimension is >= 8.
        hk = -(-8 // rows)                                    # ceil(8 / rows)
        if h % hk == 0:
            rep = hk
            rows, cols = rows * hk, (h // hk) * w

    x = img_nchw.reshape(rows, cols)                          # contiguous reshape, no copy
    scale_rows = jnp.repeat(jnp.tile(scale, n), rep)[:, None]  # (rows, 1), row -> channel
    bias_rows = jnp.repeat(jnp.tile(bias, n), rep)[:, None]    # (rows, 1)

    # ---- blocking: dense ~2 MiB tiles, ragged edges handled by Pallas --------
    target_tile_bytes = 2 << 20
    r_blk = rows if rows <= 64 else 64                        # full extent or mult-of-8
    max_lanes = max(128, (target_tile_bytes // (r_blk * itemsize)) // 128 * 128)
    l_blk = cols if cols <= max_lanes else max_lanes          # full extent or mult-of-128

    # v7x has 2 TensorCores: if a non-trivial array would be a single block,
    # split one parallel axis so both cores get work (no effect on v5e/v6e).
    if rows <= r_blk and cols <= l_blk and rows * cols * itemsize > (512 << 10):
        if cols >= 256:
            l_blk = _round_up(pl.cdiv(cols, 2), 128)
        elif rows >= 16:
            r_blk = _round_up(pl.cdiv(rows, 2), 8)

    grid = (pl.cdiv(rows, r_blk), pl.cdiv(cols, l_blk))       # rows outer, lanes inner

    out2d = pl.pallas_call(
        _normalize_kernel,
        out_shape=jax.ShapeDtypeStruct((rows, cols), out_dtype),
        grid=grid,
        in_specs=[
            pl.BlockSpec((r_blk, 1), lambda i, j: (i, 0)),        # scale per row-block
            pl.BlockSpec((r_blk, 1), lambda i, j: (i, 0)),        # bias  per row-block
            pl.BlockSpec((r_blk, l_blk), lambda i, j: (i, j)),    # image tile
        ],
        out_specs=pl.BlockSpec((r_blk, l_blk), lambda i, j: (i, j)),
        compiler_params=pltpu.CompilerParams(
            dimension_semantics=("parallel", "parallel"),
            vmem_limit_bytes=32 << 20,
        ),
        cost_estimate=pl.CostEstimate(
            flops=2 * rows * cols,
            transcendentals=0,
            bytes_accessed=rows * cols * (itemsize + jnp.dtype(out_dtype).itemsize),
        ),
    )(scale_rows, bias_rows, x)

    return out2d.reshape(n, c, h, w)


if __name__ == "__main__":
    # Deterministic channel-wise mean/std (classic NST / ImageNet values).
    mean = jnp.array([0.485, 0.456, 0.406], dtype=jnp.float32)
    std = jnp.array([0.229, 0.224, 0.225], dtype=jnp.float32)

    # Small deterministic input: batch=2, channels=3, spatial=16x16 (NCHW).
    key = jax.random.PRNGKey(0)
    img = jax.random.uniform(key, (2, 3, 16, 16), dtype=jnp.float32)

    out = normalization_forward(img, mean, std)
    out = jax.block_until_ready(out)

    # Reference check against plain JAX broadcasting semantics.
    ref = (img - mean[None, :, None, None]) / std[None, :, None, None]
    assert out.shape == ref.shape and out.dtype == ref.dtype
    # Fused scale/shift differs from (x-mean)/std by ~1 ulp; 1e-5 is still tight for f32.
    assert jnp.allclose(out, ref, atol=1e-5, rtol=1e-5)

    print("KERNEL_OK")
</pallas_src>

<mosaic_0001>
module attributes {stable_mosaic.version = 11 : i64} {
  func.func @_normalize_kernel(%arg0: i32, %arg1: i32, %arg2: memref<12x1xf32, #tpu.memory_space<vmem>>, %arg3: memref<12x1xf32, #tpu.memory_space<vmem>>, %arg4: memref<12x128xf32, #tpu.memory_space<vmem>>, %arg5: memref<12x128xf32, #tpu.memory_space<vmem>>) attributes {dimension_semantics = [#tpu.dimension_semantics<parallel>, #tpu.dimension_semantics<parallel>], iteration_bounds = array<i64: 1, 1>, scalar_prefetch = 0 : i64, scratch_operands = 0 : i64, tpu.core_type = #tpu.core_type<tc>, window_params = [{transform_indices = @transform_0, window_bounds = array<i64: 12, 1>}, {transform_indices = @transform_1, window_bounds = array<i64: 12, 1>}, {transform_indices = @transform_2, window_bounds = array<i64: 12, 128>}, {transform_indices = @transform_3, window_bounds = array<i64: 12, 128>}]} {
    %c0 = arith.constant 0 : index
    %c0_0 = arith.constant 0 : index
    %0 = vector.load %arg4[%c0, %c0_0] : memref<12x128xf32, #tpu.memory_space<vmem>>, vector<12x128xf32>
    %c0_1 = arith.constant 0 : index
    %c0_2 = arith.constant 0 : index
    %1 = vector.load %arg2[%c0_1, %c0_2] : memref<12x1xf32, #tpu.memory_space<vmem>>, vector<12x1xf32>
    %2 = vector.broadcast %1 : vector<12x1xf32> to vector<12x128xf32>
    %3 = arith.mulf %0, %2 : vector<12x128xf32>
    %c0_3 = arith.constant 0 : index
    %c0_4 = arith.constant 0 : index
    %4 = vector.load %arg3[%c0_3, %c0_4] : memref<12x1xf32, #tpu.memory_space<vmem>>, vector<12x1xf32>
    %5 = vector.broadcast %4 : vector<12x1xf32> to vector<12x128xf32>
    %6 = arith.addf %3, %5 : vector<12x128xf32>
    %c0_5 = arith.constant 0 : index
    %c0_6 = arith.constant 0 : index
    %7 = vector.load %arg5[%c0_5, %c0_6] : memref<12x128xf32, #tpu.memory_space<vmem>>, vector<12x128xf32>
    tpu.vector_store %arg5[%c0_5, %c0_6], %6 {strides = array<i32>} : memref<12x128xf32, #tpu.memory_space<vmem>>, vector<12x128xf32>,
    return
  }
  func.func @transform_0(%arg0: i32, %arg1: i32) -> (i32, i32) {
    %c0_i32 = arith.constant 0 : i32
    %c0_i32_0 = arith.constant 0 : i32
    return %arg0, %c0_i32 : i32, i32
  }
  func.func @transform_1(%arg0: i32, %arg1: i32) -> (i32, i32) {
    %c0_i32 = arith.constant 0 : i32
    %c0_i32_0 = arith.constant 0 : i32
    return %arg0, %c0_i32 : i32, i32
  }
  func.func @transform_2(%arg0: i32, %arg1: i32) -> (i32, i32) {
    %c0_i32 = arith.constant 0 : i32
    return %arg0, %arg1 : i32, i32
  }
  func.func @transform_3(%arg0: i32, %arg1: i32) -> (i32, i32) {
    %c0_i32 = arith.constant 0 : i32
    return %arg0, %arg1 : i32, i32
  }
}

</mosaic_0001>

<bundles_post_ra>
// kernel: tpu_custom_call.1
= control target key start
LH: loop header
LB: loop body
LE: loop exit
PB: predicated region body
PF: predicated region fallthrough
CT: control target
= control target key end

     0   :  { %v97_v2 = vmov 0   ;;  %s142_s0 = inlined_call_operand.vmem [shape: f32[12,1], index: 0, kind: input, shape index: {}]   ;;  %s143_s1 = inlined_call_operand.vmem [shape: f32[12,1], index: 1, kind: input, shape index: {}]   ;;  %s144_s2 = inlined_call_operand.vmem [shape: f32[12,128], index: 2, kind: input, shape index: {}]   ;;  %s145_s3 = inlined_call_operand.hbm [shape: f32[12,128], index: 3, kind: output, shape index: {}]  }
   0x1   :  { %v31_v0 = vld [vmem:[%s143_s1] sm:$0xff]  ;;  %70 = vset.pattern.permute.xlu1 %v97_v2  ;;  %69 = vset.pattern.permute.xlu0 %v97_v2 }
   0x2   :  { %v17_v1 = vld [vmem:[%s142_s0] sm:$0xff] }
   0x3   :  { %8 = vsyncpa [#allocation3], 0  ;;  %35 = vperm.xlu1 %70, %v31_v0   ;;  %21 = vperm.xlu0 %69, %v17_v1   ;;  %v32_v3 = vld [vmem:[%s143_s1 + $0x8] sm:$0xf]  ;;  %v15_v5 = vld [vmem:[%s144_s2] sm:$0xff]  ;;  %s98_s1 = smov [#allocation2]  }
   0x4   :  { %v18_v4 = vld [vmem:[%s142_s0 + $0x8] sm:$0xf]  ;;  %s51_s24 = sshll.u32 %s98_s1, 4  ;;  %s53_s0 = sshll.u32 %s145_s3, 4  ;;  %s52_s24 = int_to_ptr.vmem [resolvable:$true] %s51_s24  ;;  %s54_s0 = int_to_ptr.hbm [resolvable:$true] %s53_s0 }
   0x5   :  { %v16_v10 = vld [vmem:[%s144_s2 + $0x8] sm:$0xf]  ;;  %s99_s27 = smov 128   ;;  %s100_s28 = smov 8  }
   0xb   :  { %40 = vperm.xlu1 %70, %v32_v3   ;;  %26 = vperm.xlu0 %69, %v18_v4  }
  0x75   :  { %v36_v6 = vpop.permute.xlu1 %35  ;;  %v22_v7 = vpop.permute.xlu0 %21 }
  0x76   :  { %v29_v8 = vmul.f32 %v22_v7, %v15_v5 }
  0x78   :  { %v43_v9 = vadd.f32 %v36_v6, %v29_v8 }
  0x7a   :  { %45 = vst [vmem:[#allocation2] sm:$0xff] %v43_v9 }
  0x7d   :  { %v27_v11 = vpop.permute.xlu0 %26  ;;  %v41_v13 = vpop.permute.xlu1 %40 }
  0x7e   :  { %v30_v12 = vmul.f32 %v27_v11, %v16_v10 }
  0x80   :  { %v44_v14 = vadd.f32 %v41_v13, %v30_v12 }
  0x82   :  { %46 = vst [vmem:[#allocation2 + $0x8] sm:$0xf] %v44_v14 }
  0x83   :  { %59 = dma.vmem_to_hbm [thread:$0]  %s52_s24, 256, %s54_s0, [#allocation3], %s99_s27, %s99_s27, %s100_s28  }
  0x84   :  { %95 = dma.done.wait [#allocation3], 256  }
  0x85   :  { %96 = vsyncadd [#allocation3], 4294967040 }
  0x86   :  { %64 = vsyncpa [#allocation3], 1 }

</bundles_post_ra>
